<compile_context>
chip_gen: v5e
topology: v5e:2x2
jax: 0.10.0
libtpu: 0.0.40
codegen_flags: <defaults>
</compile_context>

<pallas_src>
import math

import jax
import jax.numpy as jnp
from jax.experimental import pallas as pl
from jax.experimental.pallas import tpu as pltpu

C1, C2, F1, F2, KSZ, L_IN = 20, 20, 25, 27, 4, 13
L1_OUT = L_IN - KSZ + 1          # 10 conv1 output positions
P1_OUT = L1_OUT // 2             # 5  positions after MaxPool1d(2)
L2_OUT = P1_OUT - KSZ + 1        # 2  conv2 output positions
HALF1 = 104                      # 5*20 pooled rows + 4 zero-pad rows (mult of 8)
HALF2 = 24                       # 20 channels + 4 zero-pad rows (mult of 8)


def _round_up(n, m):
    return (n + m - 1) // m * m


def weak_learner_kernel(x_ref, w1_ref, b1_ref, w2_ref, b2_ref,
                        fw1_ref, fb1_ref, fw2_ref, fb2_ref,
                        fw3_ref, fb3_ref, fw4_ref, fb4_ref, o_ref):
    f32 = jnp.float32
    cdt = w1_ref.dtype                       # MXU operand dtype (bf16 or f32)
    xT = x_ref[...]                          # (13, bt), batch on lanes

    # conv1 (1->20, k=4) as one feature-major Toeplitz matmul: (208,13)@(13,bt).
    c1 = jnp.maximum(
        jnp.dot(w1_ref[...], xT, preferred_element_type=f32) + b1_ref[...], 0.0)
    # MaxPool1d(2): even-position half vs odd-position half (sublane-aligned).
    p1 = jnp.maximum(c1[:HALF1, :], c1[HALF1:, :])            # (104, bt) f32

    # conv2 (20->20, k=4) Toeplitz matmul: (48,104)@(104,bt).
    c2 = jnp.maximum(
        jnp.dot(w2_ref[...], p1.astype(cdt), preferred_element_type=f32)
        + b2_ref[...], 0.0)
    # MaxPool1d(2) over the 2 output positions + flatten: (24, bt).
    q = jnp.maximum(c2[:HALF2, :], c2[HALF2:, :])

    # fc1 -> dropout (inference: identity) -> relu
    h = jnp.maximum(
        jnp.dot(fw1_ref[...], q.astype(cdt), preferred_element_type=f32)
        + fb1_ref[...], 0.0)
    # fc2 -> relu  (residual branch "temp")
    t = jnp.maximum(
        jnp.dot(fw2_ref[...], h.astype(cdt), preferred_element_type=f32)
        + fb2_ref[...], 0.0)
    # fc3 -> relu
    u = jnp.maximum(
        jnp.dot(fw3_ref[...], t.astype(cdt), preferred_element_type=f32)
        + fb3_ref[...], 0.0)
    # fc4 on residual (u + t) -> relu   (t1 == 1 branch of the PyTorch module)
    o = jnp.maximum(
        jnp.dot(fw4_ref[...], (u + t).astype(cdt), preferred_element_type=f32)
        + fb4_ref[...], 0.0)
    o_ref[...] = o                            # (1, bt) lane-dense row


def _build_conv1_toeplitz(w, b):
    # w: (C1,1,K) -> W1 (2*HALF1, 13) feature-major.
    # Rows = [even conv positions | odd conv positions]; each half is
    # [pool_pos(5) x chan(20)] plus 4 zero rows so the pool slice is a
    # sublane-aligned (multiple-of-8) split.
    W = jnp.zeros((2 * HALF1, L_IN), jnp.float32)
    bias = jnp.zeros((2 * HALF1, 1), jnp.float32)
    wk = w[:, 0, :].astype(jnp.float32)               # (C1, K)
    bf = b.astype(jnp.float32)
    for half in range(2):
        for j in range(P1_OUT):
            p = 2 * j + half                          # conv1 output position
            r0 = half * HALF1 + j * C1
            W = W.at[r0:r0 + C1, p:p + KSZ].set(wk)
            bias = bias.at[r0:r0 + C1, 0].set(bf)
    return W, bias


def _build_conv2_toeplitz(w, b):
    # w: (C2,C1,K) -> W2 (2*HALF2, HALF1) feature-major.
    # Rows = [pos0 chans + pad | pos1 chans + pad]; columns index the pooled
    # conv1 rows [pool_pos(5) x chan(20)] (+4 zero-pad columns).
    W = jnp.zeros((2 * HALF2, HALF1), jnp.float32)
    bias = jnp.zeros((2 * HALF2, 1), jnp.float32)
    wf = w.astype(jnp.float32)
    bf = b.astype(jnp.float32)
    for l in range(L2_OUT):
        r0 = l * HALF2
        for k in range(KSZ):
            c0 = (l + k) * C1
            W = W.at[r0:r0 + C2, c0:c0 + C1].set(wf[:, :, k])
        bias = bias.at[r0:r0 + C2, 0].set(bf)
    return W, bias


def _prepare_weights(params, compute_dtype):
    w1, b1 = _build_conv1_toeplitz(params["conv1_w"], params["conv1_b"])
    w2, b2 = _build_conv2_toeplitz(params["conv2_w"], params["conv2_b"])
    fw1 = jnp.zeros((F1, HALF2), jnp.float32).at[:, :C2].set(
        params["fc1_w"].astype(jnp.float32))
    f32 = jnp.float32
    return (
        w1.astype(compute_dtype), b1,                                  # (208,13),(208,1)
        w2.astype(compute_dtype), b2,                                  # (48,104),(48,1)
        fw1.astype(compute_dtype), params["fc1_b"].astype(f32).reshape(F1, 1),
        params["fc2_w"].astype(compute_dtype), params["fc2_b"].astype(f32).reshape(F2, 1),
        params["fc3_w"].astype(compute_dtype), params["fc3_b"].astype(f32).reshape(F2, 1),
        params["fc4_w"].astype(compute_dtype), params["fc4_b"].astype(f32).reshape(1, 1),
    )


def weak_learner_forward(x, params, b_tile=2048, compute_dtype=jnp.bfloat16):
    x2d = x.reshape(-1, L_IN).astype(jnp.float32)
    B = x2d.shape[0]

    # Feature-major: batch lives on the lane axis -> tile must be a mult of 128.
    Bp = _round_up(max(B, 1), 128)
    bt = min(_round_up(b_tile, 128), Bp)
    if bt == Bp and Bp > 128:
        # Split a single fat step so the "parallel" grid feeds both v7x cores.
        bt = _round_up(Bp // 2, 128)
    Bp = _round_up(Bp, bt)

    xT = jnp.zeros((L_IN, Bp), compute_dtype).at[:, :B].set(
        x2d.T.astype(compute_dtype))

    weights = _prepare_weights(params, compute_dtype)

    grid = (Bp // bt,)
    x_spec = pl.BlockSpec((L_IN, bt), lambda i: (0, i))
    # Weights/biases stay VMEM-resident: full block, constant block index.
    w_specs = [pl.BlockSpec(w.shape, lambda i: (0, 0)) for w in weights]
    out_spec = pl.BlockSpec((1, bt), lambda i: (0, i))

    out = pl.pallas_call(
        weak_learner_kernel,
        out_shape=jax.ShapeDtypeStruct((1, Bp), jnp.float32),
        grid_spec=pltpu.PrefetchScalarGridSpec(
            num_scalar_prefetch=0,
            grid=grid,
            in_specs=[x_spec] + w_specs,
            out_specs=out_spec,
        ),
        compiler_params=pltpu.CompilerParams(
            dimension_semantics=("parallel",),
        ),
    )(xT, *weights)
    return out[0, :B].reshape(B, 1)


def init_params(key):
    # Deterministic PyTorch-style uniform(-1/sqrt(fan_in), 1/sqrt(fan_in)) init.
    def uni(k, shape, bound):
        return jax.random.uniform(k, shape, jnp.float32, -bound, bound)

    ks = jax.random.split(key, 12)
    p = {}
    b = 1.0 / math.sqrt(1 * KSZ)
    p["conv1_w"] = uni(ks[0], (C1, 1, KSZ), b)
    p["conv1_b"] = uni(ks[1], (C1,), b)
    b = 1.0 / math.sqrt(C1 * KSZ)
    p["conv2_w"] = uni(ks[2], (C2, C1, KSZ), b)
    p["conv2_b"] = uni(ks[3], (C2,), b)
    b = 1.0 / math.sqrt(C2)
    p["fc1_w"] = uni(ks[4], (F1, C2), b)
    p["fc1_b"] = uni(ks[5], (F1,), b)
    b = 1.0 / math.sqrt(F1)
    p["fc2_w"] = uni(ks[6], (F2, F1), b)
    p["fc2_b"] = uni(ks[7], (F2,), b)
    b = 1.0 / math.sqrt(F2)
    p["fc3_w"] = uni(ks[8], (F2, F2), b)
    p["fc3_b"] = uni(ks[9], (F2,), b)
    p["fc4_w"] = uni(ks[10], (1, F2), b)
    p["fc4_b"] = uni(ks[11], (1,), b)
    return p


def weak_learner_ref(x, p):
    # Pure-JAX reference (inference mode: dropout = identity).
    x = x.reshape(-1, 1, L_IN)
    h = jnp.stack([jnp.einsum("bci,oci->bo", x[:, :, l:l + KSZ], p["conv1_w"])
                   for l in range(L1_OUT)], axis=-1) + p["conv1_b"][None, :, None]
    h = jax.nn.relu(h)
    h = jnp.maximum(h[:, :, 0::2], h[:, :, 1::2])          # maxpool(2) -> (B,20,5)
    h = jnp.stack([jnp.einsum("bci,oci->bo", h[:, :, l:l + KSZ], p["conv2_w"])
                   for l in range(L2_OUT)], axis=-1) + p["conv2_b"][None, :, None]
    h = jax.nn.relu(h)
    h = jnp.maximum(h[:, :, 0::2], h[:, :, 1::2])          # (B,20,1)
    h = h.reshape(h.shape[0], -1)                          # (B,20)
    h = jax.nn.relu(h @ p["fc1_w"].T + p["fc1_b"])
    t = jax.nn.relu(h @ p["fc2_w"].T + p["fc2_b"])
    u = jax.nn.relu(t @ p["fc3_w"].T + p["fc3_b"])
    return jax.nn.relu((u + t) @ p["fc4_w"].T + p["fc4_b"])


if __name__ == "__main__":
    key = jax.random.PRNGKey(0)
    kx, kp, kx2 = jax.random.split(key, 3)
    params = init_params(kp)

    # Small batch, f32 MXU operands: validates the Toeplitz / pool / residual
    # wiring (single grid step).  Modest tolerance: the MXU at DEFAULT precision
    # may truncate f32 operands internally.
    x = jax.random.normal(kx, (8, L_IN), jnp.float32)        # reshaped to (8,1,13)
    out = jax.block_until_ready(
        weak_learner_forward(x, params, compute_dtype=jnp.float32))
    ref = weak_learner_ref(x, params)
    assert out.shape == (8, 1)
    assert jnp.allclose(out, ref, atol=2e-2, rtol=2e-2), (out, ref)

    # Larger, non-multiple batch with the default bf16 path: exercises the
    # padded batch grid (2 "parallel" steps) and bf16 MXU operands with f32
    # accumulation (looser tolerance, expected ~1e-2 relative error).
    x2 = jax.random.normal(kx2, (300, L_IN), jnp.float32)
    out2 = jax.block_until_ready(weak_learner_forward(x2, params))
    ref2 = weak_learner_ref(x2, params)
    assert out2.shape == (300, 1)
    assert jnp.allclose(out2, ref2, atol=5e-2, rtol=5e-2)

    print("KERNEL_OK")
</pallas_src>

<mosaic_0001>
module attributes {stable_mosaic.version = 11 : i64} {
  func.func @weak_learner_kernel(%arg0: i32, %arg1: memref<13x128xf32, #tpu.memory_space<vmem>>, %arg2: memref<208x13xf32, #tpu.memory_space<vmem>>, %arg3: memref<208x1xf32, #tpu.memory_space<vmem>>, %arg4: memref<48x104xf32, #tpu.memory_space<vmem>>, %arg5: memref<48x1xf32, #tpu.memory_space<vmem>>, %arg6: memref<25x24xf32, #tpu.memory_space<vmem>>, %arg7: memref<25x1xf32, #tpu.memory_space<vmem>>, %arg8: memref<27x25xf32, #tpu.memory_space<vmem>>, %arg9: memref<27x1xf32, #tpu.memory_space<vmem>>, %arg10: memref<27x27xf32, #tpu.memory_space<vmem>>, %arg11: memref<27x1xf32, #tpu.memory_space<vmem>>, %arg12: memref<1x27xf32, #tpu.memory_space<vmem>>, %arg13: memref<1x1xf32, #tpu.memory_space<vmem>>, %arg14: memref<1x128xf32, #tpu.memory_space<vmem>>) attributes {dimension_semantics = [#tpu.dimension_semantics<parallel>], iteration_bounds = array<i64: 1>, scalar_prefetch = 0 : i64, scratch_operands = 0 : i64, tpu.core_type = #tpu.core_type<tc>, window_params = [{transform_indices = @transform_0, window_bounds = array<i64: 13, 128>}, {pipeline_mode = #tpu.pipeline_mode<synchronous>, transform_indices = @transform_1, window_bounds = array<i64: 208, 13>}, {pipeline_mode = #tpu.pipeline_mode<synchronous>, transform_indices = @transform_2, window_bounds = array<i64: 208, 1>}, {pipeline_mode = #tpu.pipeline_mode<synchronous>, transform_indices = @transform_3, window_bounds = array<i64: 48, 104>}, {pipeline_mode = #tpu.pipeline_mode<synchronous>, transform_indices = @transform_4, window_bounds = array<i64: 48, 1>}, {pipeline_mode = #tpu.pipeline_mode<synchronous>, transform_indices = @transform_5, window_bounds = array<i64: 25, 24>}, {pipeline_mode = #tpu.pipeline_mode<synchronous>, transform_indices = @transform_6, window_bounds = array<i64: 25, 1>}, {pipeline_mode = #tpu.pipeline_mode<synchronous>, transform_indices = @transform_7, window_bounds = array<i64: 27, 25>}, {pipeline_mode = #tpu.pipeline_mode<synchronous>, transform_indices = @transform_8, window_bounds = array<i64: 27, 1>}, {pipeline_mode = #tpu.pipeline_mode<synchronous>, transform_indices = @transform_9, window_bounds = array<i64: 27, 27>}, {pipeline_mode = #tpu.pipeline_mode<synchronous>, transform_indices = @transform_10, window_bounds = array<i64: 27, 1>}, {pipeline_mode = #tpu.pipeline_mode<synchronous>, transform_indices = @transform_11, window_bounds = array<i64: 1, 27>}, {pipeline_mode = #tpu.pipeline_mode<synchronous>, transform_indices = @transform_12, window_bounds = array<i64: 1, 1>}, {transform_indices = @transform_13, window_bounds = array<i64: 1, 128>}]} {
    %c0 = arith.constant 0 : index
    %c0_0 = arith.constant 0 : index
    %0 = vector.load %arg1[%c0, %c0_0] : memref<13x128xf32, #tpu.memory_space<vmem>>, vector<13x128xf32>
    %c0_1 = arith.constant 0 : index
    %c0_2 = arith.constant 0 : index
    %1 = vector.load %arg2[%c0_1, %c0_2] : memref<208x13xf32, #tpu.memory_space<vmem>>, vector<208x13xf32>
    %cst = arith.constant dense<0.000000e+00> : vector<208x128xf32>
    %2 = tpu.matmul %1, %0, %cst {dimension_numbers = #tpu.dot_dimension_numbers<[1], [0], [0], [1], [0, 0, 1, 1], [], []>} : vector<208x13xf32>, vector<13x128xf32>, vector<208x128xf32> -> vector<208x128xf32>
    %c0_3 = arith.constant 0 : index
    %c0_4 = arith.constant 0 : index
    %3 = vector.load %arg3[%c0_3, %c0_4] : memref<208x1xf32, #tpu.memory_space<vmem>>, vector<208x1xf32>
    %4 = vector.broadcast %3 : vector<208x1xf32> to vector<208x128xf32>
    %5 = arith.addf %2, %4 : vector<208x128xf32>
    %cst_5 = arith.constant 0.000000e+00 : f32
    %6 = vector.broadcast %cst_5 : f32 to vector<208x128xf32>
    %7 = arith.maximumf %5, %6 : vector<208x128xf32>
    %8 = vector.extract_strided_slice %7 {offsets = [0, 0], sizes = [104, 128], strides = [1, 1]} : vector<208x128xf32> to vector<104x128xf32>
    %9 = vector.extract_strided_slice %7 {offsets = [104, 0], sizes = [104, 128], strides = [1, 1]} : vector<208x128xf32> to vector<104x128xf32>
    %10 = arith.maximumf %8, %9 : vector<104x128xf32>
    %c0_6 = arith.constant 0 : index
    %c0_7 = arith.constant 0 : index
    %11 = vector.load %arg4[%c0_6, %c0_7] : memref<48x104xf32, #tpu.memory_space<vmem>>, vector<48x104xf32>
    %cst_8 = arith.constant dense<0.000000e+00> : vector<48x128xf32>
    %12 = tpu.matmul %11, %10, %cst_8 {dimension_numbers = #tpu.dot_dimension_numbers<[1], [0], [0], [1], [0, 0, 1, 1], [], []>} : vector<48x104xf32>, vector<104x128xf32>, vector<48x128xf32> -> vector<48x128xf32>
    %c0_9 = arith.constant 0 : index
    %c0_10 = arith.constant 0 : index
    %13 = vector.load %arg5[%c0_9, %c0_10] : memref<48x1xf32, #tpu.memory_space<vmem>>, vector<48x1xf32>
    %14 = vector.broadcast %13 : vector<48x1xf32> to vector<48x128xf32>
    %15 = arith.addf %12, %14 : vector<48x128xf32>
    %cst_11 = arith.constant 0.000000e+00 : f32
    %16 = vector.broadcast %cst_11 : f32 to vector<48x128xf32>
    %17 = arith.maximumf %15, %16 : vector<48x128xf32>
    %18 = vector.extract_strided_slice %17 {offsets = [0, 0], sizes = [24, 128], strides = [1, 1]} : vector<48x128xf32> to vector<24x128xf32>
    %19 = vector.extract_strided_slice %17 {offsets = [24, 0], sizes = [24, 128], strides = [1, 1]} : vector<48x128xf32> to vector<24x128xf32>
    %20 = arith.maximumf %18, %19 : vector<24x128xf32>
    %c0_12 = arith.constant 0 : index
    %c0_13 = arith.constant 0 : index
    %21 = vector.load %arg6[%c0_12, %c0_13] : memref<25x24xf32, #tpu.memory_space<vmem>>, vector<25x24xf32>
    %cst_14 = arith.constant dense<0.000000e+00> : vector<25x128xf32>
    %22 = tpu.matmul %21, %20, %cst_14 {dimension_numbers = #tpu.dot_dimension_numbers<[1], [0], [0], [1], [0, 0, 1, 1], [], []>} : vector<25x24xf32>, vector<24x128xf32>, vector<25x128xf32> -> vector<25x128xf32>
    %c0_15 = arith.constant 0 : index
    %c0_16 = arith.constant 0 : index
    %23 = vector.load %arg7[%c0_15, %c0_16] : memref<25x1xf32, #tpu.memory_space<vmem>>, vector<25x1xf32>
    %24 = vector.broadcast %23 : vector<25x1xf32> to vector<25x128xf32>
    %25 = arith.addf %22, %24 : vector<25x128xf32>
    %cst_17 = arith.constant 0.000000e+00 : f32
    %26 = vector.broadcast %cst_17 : f32 to vector<25x128xf32>
    %27 = arith.maximumf %25, %26 : vector<25x128xf32>
    %c0_18 = arith.constant 0 : index
    %c0_19 = arith.constant 0 : index
    %28 = vector.load %arg8[%c0_18, %c0_19] : memref<27x25xf32, #tpu.memory_space<vmem>>, vector<27x25xf32>
    %cst_20 = arith.constant dense<0.000000e+00> : vector<27x128xf32>
    %29 = tpu.matmul %28, %27, %cst_20 {dimension_numbers = #tpu.dot_dimension_numbers<[1], [0], [0], [1], [0, 0, 1, 1], [], []>} : vector<27x25xf32>, vector<25x128xf32>, vector<27x128xf32> -> vector<27x128xf32>
    %c0_21 = arith.constant 0 : index
    %c0_22 = arith.constant 0 : index
    %30 = vector.load %arg9[%c0_21, %c0_22] : memref<27x1xf32, #tpu.memory_space<vmem>>, vector<27x1xf32>
    %31 = vector.broadcast %30 : vector<27x1xf32> to vector<27x128xf32>
    %32 = arith.addf %29, %31 : vector<27x128xf32>
    %cst_23 = arith.constant 0.000000e+00 : f32
    %33 = vector.broadcast %cst_23 : f32 to vector<27x128xf32>
    %34 = arith.maximumf %32, %33 : vector<27x128xf32>
    %c0_24 = arith.constant 0 : index
    %c0_25 = arith.constant 0 : index
    %35 = vector.load %arg10[%c0_24, %c0_25] : memref<27x27xf32, #tpu.memory_space<vmem>>, vector<27x27xf32>
    %cst_26 = arith.constant dense<0.000000e+00> : vector<27x128xf32>
    %36 = tpu.matmul %35, %34, %cst_26 {dimension_numbers = #tpu.dot_dimension_numbers<[1], [0], [0], [1], [0, 0, 1, 1], [], []>} : vector<27x27xf32>, vector<27x128xf32>, vector<27x128xf32> -> vector<27x128xf32>
    %c0_27 = arith.constant 0 : index
    %c0_28 = arith.constant 0 : index
    %37 = vector.load %arg11[%c0_27, %c0_28] : memref<27x1xf32, #tpu.memory_space<vmem>>, vector<27x1xf32>
    %38 = vector.broadcast %37 : vector<27x1xf32> to vector<27x128xf32>
    %39 = arith.addf %36, %38 : vector<27x128xf32>
    %cst_29 = arith.constant 0.000000e+00 : f32
    %40 = vector.broadcast %cst_29 : f32 to vector<27x128xf32>
    %41 = arith.maximumf %39, %40 : vector<27x128xf32>
    %c0_30 = arith.constant 0 : index
    %c0_31 = arith.constant 0 : index
    %42 = vector.load %arg12[%c0_30, %c0_31] : memref<1x27xf32, #tpu.memory_space<vmem>>, vector<1x27xf32>
    %43 = arith.addf %41, %34 : vector<27x128xf32>
    %cst_32 = arith.constant dense<0.000000e+00> : vector<1x128xf32>
    %44 = tpu.matmul %42, %43, %cst_32 {dimension_numbers = #tpu.dot_dimension_numbers<[1], [0], [0], [1], [0, 0, 1, 1], [], []>} : vector<1x27xf32>, vector<27x128xf32>, vector<1x128xf32> -> vector<1x128xf32>
    %c0_33 = arith.constant 0 : index
    %c0_34 = arith.constant 0 : index
    %45 = vector.load %arg13[%c0_33, %c0_34] : memref<1x1xf32, #tpu.memory_space<vmem>>, vector<1x1xf32>
    %46 = vector.broadcast %45 : vector<1x1xf32> to vector<1x128xf32>
    %47 = arith.addf %44, %46 : vector<1x128xf32>
    %cst_35 = arith.constant 0.000000e+00 : f32
    %48 = vector.broadcast %cst_35 : f32 to vector<1x128xf32>
    %49 = arith.maximumf %47, %48 : vector<1x128xf32>
    %c0_36 = arith.constant 0 : index
    %c0_37 = arith.constant 0 : index
    %50 = vector.load %arg14[%c0_36, %c0_37] : memref<1x128xf32, #tpu.memory_space<vmem>>, vector<1x128xf32>
    tpu.vector_store %arg14[%c0_36, %c0_37], %49 {strides = array<i32>} : memref<1x128xf32, #tpu.memory_space<vmem>>, vector<1x128xf32>,
    return
  }
  func.func @transform_0(%arg0: i32) -> (i32, i32) {
    %c0_i32 = arith.constant 0 : i32
    %c0_i32_0 = arith.constant 0 : i32
    return %c0_i32, %arg0 : i32, i32
  }
  func.func @transform_1(%arg0: i32) -> (i32, i32) {
    %c0_i32 = arith.constant 0 : i32
    %c0_i32_0 = arith.constant 0 : i32
    %c0_i32_1 = arith.constant 0 : i32
    return %c0_i32, %c0_i32_0 : i32, i32
  }
  func.func @transform_2(%arg0: i32) -> (i32, i32) {
    %c0_i32 = arith.constant 0 : i32
    %c0_i32_0 = arith.constant 0 : i32
    %c0_i32_1 = arith.constant 0 : i32
    return %c0_i32, %c0_i32_0 : i32, i32
  }
  func.func @transform_3(%arg0: i32) -> (i32, i32) {
    %c0_i32 = arith.constant 0 : i32
    %c0_i32_0 = arith.constant 0 : i32
    %c0_i32_1 = arith.constant 0 : i32
    return %c0_i32, %c0_i32_0 : i32, i32
  }
  func.func @transform_4(%arg0: i32) -> (i32, i32) {
    %c0_i32 = arith.constant 0 : i32
    %c0_i32_0 = arith.constant 0 : i32
    %c0_i32_1 = arith.constant 0 : i32
    return %c0_i32, %c0_i32_0 : i32, i32
  }
  func.func @transform_5(%arg0: i32) -> (i32, i32) {
    %c0_i32 = arith.constant 0 : i32
    %c0_i32_0 = arith.constant 0 : i32
    %c0_i32_1 = arith.constant 0 : i32
    return %c0_i32, %c0_i32_0 : i32, i32
  }
  func.func @transform_6(%arg0: i32) -> (i32, i32) {
    %c0_i32 = arith.constant 0 : i32
    %c0_i32_0 = arith.constant 0 : i32
    %c0_i32_1 = arith.constant 0 : i32
    return %c0_i32, %c0_i32_0 : i32, i32
  }
  func.func @transform_7(%arg0: i32) -> (i32, i32) {
    %c0_i32 = arith.constant 0 : i32
    %c0_i32_0 = arith.constant 0 : i32
    %c0_i32_1 = arith.constant 0 : i32
    return %c0_i32, %c0_i32_0 : i32, i32
  }
  func.func @transform_8(%arg0: i32) -> (i32, i32) {
    %c0_i32 = arith.constant 0 : i32
    %c0_i32_0 = arith.constant 0 : i32
    %c0_i32_1 = arith.constant 0 : i32
    return %c0_i32, %c0_i32_0 : i32, i32
  }
  func.func @transform_9(%arg0: i32) -> (i32, i32) {
    %c0_i32 = arith.constant 0 : i32
    %c0_i32_0 = arith.constant 0 : i32
    %c0_i32_1 = arith.constant 0 : i32
    return %c0_i32, %c0_i32_0 : i32, i32
  }
  func.func @transform_10(%arg0: i32) -> (i32, i32) {
    %c0_i32 = arith.constant 0 : i32
    %c0_i32_0 = arith.constant 0 : i32
    %c0_i32_1 = arith.constant 0 : i32
    return %c0_i32, %c0_i32_0 : i32, i32
  }
  func.func @transform_11(%arg0: i32) -> (i32, i32) {
    %c0_i32 = arith.constant 0 : i32
    %c0_i32_0 = arith.constant 0 : i32
    %c0_i32_1 = arith.constant 0 : i32
    return %c0_i32, %c0_i32_0 : i32, i32
  }
  func.func @transform_12(%arg0: i32) -> (i32, i32) {
    %c0_i32 = arith.constant 0 : i32
    %c0_i32_0 = arith.constant 0 : i32
    %c0_i32_1 = arith.constant 0 : i32
    return %c0_i32, %c0_i32_0 : i32, i32
  }
  func.func @transform_13(%arg0: i32) -> (i32, i32) {
    %c0_i32 = arith.constant 0 : i32
    %c0_i32_0 = arith.constant 0 : i32
    return %c0_i32, %arg0 : i32, i32
  }
}

</mosaic_0001>

<bundles_post_ra>
// kernel: tpu_custom_call.1
= control target key start
LH: loop header
LB: loop body
LE: loop exit
PB: predicated region body
PF: predicated region fallthrough
CT: control target
= control target key end

     0   :  { %s1343_s0 = inlined_call_operand.vmem [shape: f32[13,128], index: 0, kind: input, shape index: {}]   ;;  %s1344_s1 = inlined_call_operand.vmem [shape: f32[208,13], index: 1, kind: input, shape index: {}]   ;;  %s1345_s2 = inlined_call_operand.vmem [shape: f32[208,1], index: 2, kind: input, shape index: {}]   ;;  %s1346_s3 = inlined_call_operand.vmem [shape: f32[48,104], index: 3, kind: input, shape index: {}]   ;;  %s1347_s4 = inlined_call_operand.vmem [shape: f32[48,1], index: 4, kind: input, shape index: {}]   ;;  %s1348_s5 = inlined_call_operand.vmem [shape: f32[25,24], index: 5, kind: input, shape index: {}]   ;;  %s1349_s6 = inlined_call_operand.vmem [shape: f32[25,1], index: 6, kind: input, shape index: {}]   ;;  %s1350_s7 = inlined_call_operand.vmem [shape: f32[27,25], index: 7, kind: input, shape index: {}]   ;;  %s1351_s8 = inlined_call_operand.vmem [shape: f32[27,1], index: 8, kind: input, shape index: {}]   ;;  %s1352_s9 = inlined_call_operand.vmem [shape: f32[27,27], index: 9, kind: input, shape index: {}]   ;;  %s1353_s10 = inlined_call_operand.vmem [shape: f32[27,1], index: 10, kind: input, shape index: {}]   ;;  %s1354_s11 = inlined_call_operand.vmem [shape: f32[1,27], index: 11, kind: input, shape index: {}]   ;;  %s1355_s12 = inlined_call_operand.<no memory space> [shape: f32[1,1], index: 12, kind: input, shape index: {}]   ;;  %s1356_s13 = inlined_call_operand.hbm [shape: f32[1,128], index: 13, kind: output, shape index: {}]  }
   0x1   :  { %v18_v0 = vstv %s1355_s12 }
   0x2   :  { %19 = vst [vmem:[#allocation2] sm:$0x1] %v18_v0 }
   0x3   :  { %v48_v1 = vld [vmem:[%s1343_s0 + $0x8] sm:$0x1f]  ;;  %vm310_vm0 = vcmask 1044480   ;;  %v925_v2 = vmov 0   ;;  %v87_v3 = vld [vmem:[%s1345_s2 + $0x60] sm:$0xff]  ;;  %v86_v4 = vld [vmem:[%s1345_s2 + $0x58] sm:$0xff] }
   0x4   :  { %898 = vset.pattern.permute.xlu2 %v925_v2  ;;  %897 = vset.pattern.permute.xlu1 %v925_v2  ;;  %v85_v5 = vld [vmem:[%s1345_s2 + $0x50] sm:$0xff]  ;;  %v47_v6 = vld [vmem:[%s1343_s0] sm:$0xff]  ;;  %vm231_vm1 = vcmask 105472   ;;  %v68_v9 = vld [vmem:[%s1344_s1 + $0x98] sm:$0xff] }
   0x5   :  { %896 = vset.pattern.permute.xlu0 %v925_v2  ;;  %839 = vmatpush.msk.msra.mxu0 %vm310_vm0, %v48_v1  ;;  %v49_v7 = vld [vmem:[%s1344_s1] sm:$0xff]  ;;  %v100_v10 = vld [vmem:[%s1345_s2 + $0xc8] sm:$0xff]  ;;  %v98_v12 = vld [vmem:[%s1345_s2 + $0xb8] sm:$0xff] }
   0x6   :  { %888 = vmatpush.msk.msra.mxu1 %vm310_vm0, %v48_v1  ;;  %890 = vmatpush.msk.msra.mxu3 %vm310_vm0, %v48_v1  ;;  %v61_v8 = vld [vmem:[%s1344_s1 + $0x60] sm:$0xff]  ;;  %v67_v13 = vld [vmem:[%s1344_s1 + $0x90] sm:$0xff] }
   0x7   :  { %163 = vperm.xlu0 %896, %v87_v3   ;;  %158 = vperm.xlu1 %897, %v86_v4   ;;  %v99_v11 = vld [vmem:[%s1345_s2 + $0xc0] sm:$0xff] }
   0x8   :  { %153 = vperm.xlu2 %898, %v85_v5   ;;  %329 = vmatpush.msra.mxu0 %v47_v6 }
   0x9   :  { %891 = vmatpush.msra.mxu1 %v47_v6  ;;  %893 = vmatpush.msra.mxu3 %v47_v6 }
   0xa   :  { %840 = vmatmul.msk.f32.vlgmr.msra.gmra.mxu0 %vm231_vm1, %v49_v7  ;;  %852 = vmatmul.msk.f32.vlgmr.msra.gmra.mxu1 %vm231_vm1, %v61_v8 }
   0xb   :  { %859 = vmatmul.msk.f32.vlgmr.msra.gmra.mxu3 %vm231_vm1, %v68_v9  ;;  %889 = vmatpush.msk.msra.mxu2 %vm310_vm0, %v48_v1 }
   0xd   :  { %892 = vmatpush.msra.mxu2 %v47_v6 }
   0xe   :  { %858 = vmatmul.msk.f32.vlgmr.msra.gmra.mxu2 %vm231_vm1, %v67_v13 }
   0xf   :  { %20 = vsyncpa [#allocation4], 0  ;;  %228 = vperm.xlu0 %896, %v100_v10   ;;  %223 = vperm.xlu1 %897, %v99_v11   ;;  %v50_v14 = vld [vmem:[%s1344_s1 + $0x8] sm:$0xff]  ;;  %v69_v16 = vld [vmem:[%s1344_s1 + $0xa0] sm:$0xff]  ;;  %vm490_vm2 = vcmask 850944   ;;  %vm581_vm3 = vcmask 195584  }
  0x10   :  { %v62_v15 = vld [vmem:[%s1344_s1 + $0x68] sm:$0xff]  ;;  %218 = vperm.xlu2 %898, %v98_v12   ;;  %v97_v17 = vld [vmem:[%s1345_s2 + $0xb0] sm:$0xff]  ;;  %v83_v19 = vld [vmem:[%s1345_s2 + $0x40] sm:$0xff]  ;;  %vm668_vm4 = vcmask 1040384   ;;  %vm655_vm5 = vcmask 203776   ;;  %vm746_vm6 = vcmask 1042432  }
  0x11   :  { %v84_v18 = vld [vmem:[%s1345_s2 + $0x48] sm:$0xff]  ;;  %v51_v20 = vld [vmem:[%s1344_s1 + $0x10] sm:$0xff]  ;;  %v82_v24 = vld [vmem:[%s1345_s2 + $0x38] sm:$0xff]  ;;  %vm733_vm7 = vcmask 220160   ;;  %s926_s21 = smov [#allocation3]   ;;  %s830_s23 = sshll.u32 %s1356_s13, 4  ;;  %s831_s23 = int_to_ptr.hbm [resolvable:$true] %s830_s23 }
  0x12   :  { %841 = vmatmul.msk.f32.gmra.mxu0 %vm231_vm1, %v50_v14  ;;  %853 = vmatmul.msk.f32.gmra.mxu1 %vm231_vm1, %v62_v15  ;;  %v63_v21 = vld [vmem:[%s1344_s1 + $0x70] sm:$0xff]  ;;  %v70_v22 = vld [vmem:[%s1344_s1 + $0xa8] sm:$0xff]  ;;  %v95_v25 = vld [vmem:[%s1345_s2 + $0xa0] sm:$0xff] }
  0x13   :  { %860 = vmatmul.msk.f32.gmra.mxu3 %vm231_vm1, %v69_v16  ;;  %v96_v23 = vld [vmem:[%s1345_s2 + $0xa8] sm:$0xff]  ;;  %v52_v26 = vld [vmem:[%s1344_s1 + $0x18] sm:$0xff]  ;;  %v71_v28 = vld [vmem:[%s1344_s1 + $0xb0] sm:$0xff] }
  0x14   :  { %v64_v27 = vld [vmem:[%s1344_s1 + $0x78] sm:$0xff]  ;;  %v81_v30 = vld [vmem:[%s1345_s2 + $0x30] sm:$0xff]  ;;  %v80_v31 = vld [vmem:[%s1345_s2 + $0x28] sm:$0xff] }
  0x15   :  { %v94_v29 = vld [vmem:[%s1345_s2 + $0x98] sm:$0xff]  ;;  %v53_v32 = vld [vmem:[%s1344_s1 + $0x20] sm:$0xff]  ;;  %v93_v35 = vld [vmem:[%s1345_s2 + $0x90] sm:$0xff] }
  0x16   :  { %v65_v33 = vld [vmem:[%s1344_s1 + $0x80] sm:$0xff]  ;;  %v72_v34 = vld [vmem:[%s1344_s1 + $0xb8] sm:$0xff]  ;;  %v92_v37 = vld [vmem:[%s1345_s2 + $0x88] sm:$0xff] }
  0x17   :  { %213 = vperm.xlu1 %897, %v97_v17   ;;  %148 = vperm.xlu0 %896, %v84_v18   ;;  %v79_v36 = vld [vmem:[%s1345_s2 + $0x20] sm:$0xff]  ;;  %v54_v38 = vld [vmem:[%s1344_s1 + $0x28] sm:$0xff]  ;;  %v78_v42 = vld [vmem:[%s1345_s2 + $0x18] sm:$0xff] }
  0x18   :  { %143 = vperm.xlu2 %898, %v83_v19   ;;  %v66_v39 = vld [vmem:[%s1344_s1 + $0x88] sm:$0xff]  ;;  %v73_v40 = vld [vmem:[%s1344_s1 + $0xc0] sm:$0xff]  ;;  %v77_v43 = vld [vmem:[%s1345_s2 + $0x10] sm:$0xff] }
  0x19   :  { %v91_v41 = vld [vmem:[%s1345_s2 + $0x80] sm:$0xff]  ;;  %v55_v44 = vld [vmem:[%s1344_s1 + $0x30] sm:$0xff]  ;;  %v74_v45 = vld [vmem:[%s1344_s1 + $0xc8] sm:$0xff] }
  0x1a   :  { %842 = vmatmul.msk.f32.gmra.mxu0 %vm231_vm1, %v51_v20  ;;  %854 = vmatmul.msk.f32.gmra.mxu1 %vm231_vm1, %v63_v21  ;;  %v90_v46 = vld [vmem:[%s1345_s2 + $0x78] sm:$0xff]  ;;  %v76_v47 = vld [vmem:[%s1345_s2 + $0x8] sm:$0xff]  ;;  %v89_v48 = vld [vmem:[%s1345_s2 + $0x70] sm:$0xff] }
  0x1b   :  { %861 = vmatmul.msk.f32.gmra.mxu3 %vm231_vm1, %v70_v22  ;;  %v56_v49 = vld [vmem:[%s1344_s1 + $0x38] sm:$0xff]  ;;  %v88_v50 = vld [vmem:[%s1345_s2 + $0x68] sm:$0xff]  ;;  %v75_v51 = vld [vmem:[%s1345_s2] sm:$0xff]  ;;  %s828_s2 = sshll.u32 %s926_s21, 4  ;;  %s829_s2 = int_to_ptr.vmem [resolvable:$true] %s828_s2 }
  0x1c   :  { %v456_v52 = vld [vmem:[%s1347_s4 + $0x10] sm:$0xff]  ;;  %v57_v53 = vld [vmem:[%s1344_s1 + $0x40] sm:$0xff]  ;;  %v455_v54 = vld [vmem:[%s1347_s4 + $0x8] sm:$0xff] }
  0x1d   :  { %v459_v55 = vld [vmem:[%s1347_s4 + $0x28] sm:$0xff]  ;;  %v458_v56 = vld [vmem:[%s1347_s4 + $0x20] sm:$0xff]  ;;  %v457_v58 = vld [vmem:[%s1347_s4 + $0x18] sm:$0xff] }
  0x1e   :  { %v58_v57 = vld [vmem:[%s1344_s1 + $0x48] sm:$0xff]  ;;  %v454_v59 = vld [vmem:[%s1347_s4] sm:$0xff]  ;;  %v560_v60 = vld [vmem:[%s1349_s6 + $0x18] sm:$0x1] }
  0x1f   :  { %208 = vperm.xlu0 %896, %v96_v23   ;;  %138 = vperm.xlu1 %897, %v82_v24   ;;  %v59_v61 = vld [vmem:[%s1344_s1 + $0x50] sm:$0xff]  ;;  %v558_v62 = vld [vmem:[%s1349_s6 + $0x8] sm:$0xff]  ;;  %v557_v0 = vld [vmem:[%s1349_s6] sm:$0xff] }
  0x20   :  { %203 = vperm.xlu2 %898, %v95_v25   ;;  %v559_v63 = vld [vmem:[%s1349_s6 + $0x10] sm:$0xff]  ;;  %v60_v1 = vld [vmem:[%s1344_s1 + $0x58] sm:$0xff]  ;;  %v632_v4 = vld [vmem:[%s1351_s8 + $0x8] sm:$0xff] }
  0x21   :  { %v633_v2 = vld [vmem:[%s1351_s8 + $0x10] sm:$0xff]  ;;  %v634_v3 = vld [vmem:[%s1351_s8 + $0x18] sm:$0x7]  ;;  %v631_v6 = vld [vmem:[%s1351_s8] sm:$0xff] }
  0x22   :  { %843 = vmatmul.msk.f32.gmra.mxu0 %vm231_vm1, %v52_v26  ;;  %855 = vmatmul.msk.f32.gmra.mxu1 %vm231_vm1, %v64_v27  ;;  %v712_v5 = vld [vmem:[%s1353_s10 + $0x18] sm:$0x7]  ;;  %v711_v7 = vld [vmem:[%s1353_s10 + $0x10] sm:$0xff]  ;;  %v709_v8 = vld [vmem:[%s1353_s10] sm:$0xff] }
  0x23   :  { %862 = vmatmul.msk.f32.gmra.mxu3 %vm231_vm1, %v71_v28  ;;  %v710_v9 = vld [vmem:[%s1353_s10 + $0x8] sm:$0xff]  ;;  %v788_v10 = vld [vmem:[#allocation2] sm:$0x1] }
  0x27   :  { %198 = vperm.xlu1 %897, %v94_v29   ;;  %133 = vperm.xlu0 %896, %v81_v30  }
  0x28   :  { %128 = vperm.xlu2 %898, %v80_v31  }
  0x2a   :  { %844 = vmatmul.msk.f32.gmra.mxu0 %vm231_vm1, %v53_v32  ;;  %856 = vmatmul.msk.f32.gmra.mxu1 %vm231_vm1, %v65_v33 }
  0x2b   :  { %863 = vmatmul.msk.f32.gmra.mxu3 %vm231_vm1, %v72_v34 }
  0x2f   :  { %193 = vperm.xlu0 %896, %v93_v35   ;;  %123 = vperm.xlu1 %897, %v79_v36  }
  0x30   :  { %188 = vperm.xlu2 %898, %v92_v37  }
  0x32   :  { %845 = vmatmul.msk.f32.gmra.mxu0 %vm231_vm1, %v54_v38  ;;  %857 = vmatmul.msk.f32.gmra.mxu1 %vm231_vm1, %v66_v39 }
  0x33   :  { %864 = vmatmul.msk.f32.gmra.mxu3 %vm231_vm1, %v73_v40 }
  0x37   :  { %183 = vperm.xlu1 %897, %v91_v41   ;;  %118 = vperm.xlu0 %896, %v78_v42  }
  0x38   :  { %113 = vperm.xlu2 %898, %v77_v43  }
  0x3a   :  { %846 = vmatmul.msk.f32.gmra.mxu0 %vm231_vm1, %v55_v44 }
  0x3b   :  { %865 = vmatmul.msk.f32.gmra.mxu3 %vm231_vm1, %v74_v45 }
  0x3f   :  { %178 = vperm.xlu0 %896, %v90_v46   ;;  %108 = vperm.xlu1 %897, %v76_v47  }
  0x40   :  { %173 = vperm.xlu2 %898, %v89_v48  }
  0x42   :  { %847 = vmatmul.msk.f32.gmra.mxu0 %vm231_vm1, %v56_v49 }
  0x47   :  { %168 = vperm.xlu1 %897, %v88_v50   ;;  %103 = vperm.xlu0 %896, %v75_v51  }
  0x48   :  { %472 = vperm.xlu2 %898, %v456_v52  }
  0x4a   :  { %848 = vmatmul.msk.f32.gmra.mxu0 %vm231_vm1, %v57_v53 }
  0x4f   :  { %467 = vperm.xlu1 %897, %v455_v54   ;;  %487 = vperm.xlu0 %896, %v459_v55  }
  0x50   :  { %482 = vperm.xlu2 %898, %v458_v56  }
  0x52   :  { %849 = vmatmul.msk.f32.gmra.mxu0 %vm231_vm1, %v58_v57 }
  0x57   :  { %477 = vperm.xlu1 %897, %v457_v58   ;;  %462 = vperm.xlu0 %896, %v454_v59  }
  0x58   :  { %578 = vperm.xlu2 %898, %v560_v60  }
  0x5a   :  { %850 = vmatmul.msk.f32.gmra.mxu0 %vm231_vm1, %v59_v61 }
  0x5f   :  { %568 = vperm.xlu1 %897, %v558_v62   ;;  %573 = vperm.xlu0 %896, %v559_v63  }
  0x60   :  { %563 = vperm.xlu2 %898, %v557_v0  }
  0x62   :  { %851 = vmatmul.msk.f32.gmra.mxu0 %vm231_vm1, %v60_v1  ;;  %v154_v22 = vpop.permute.xlu2 %153 }
  0x67   :  { %647 = vperm.xlu1 %897, %v633_v2   ;;  %652 = vperm.xlu0 %896, %v634_v3  }
  0x68   :  { %642 = vperm.xlu2 %898, %v632_v4  }
  0x6a   :  { %v219_v27 = vpop.permute.xlu2 %218 }
  0x6f   :  { %730 = vperm.xlu1 %897, %v712_v5   ;;  %637 = vperm.xlu0 %896, %v631_v6  }
  0x70   :  { %725 = vperm.xlu2 %898, %v711_v7  }
  0x72   :  { %v144_v33 = vpop.permute.xlu2 %143 }
  0x77   :  { %715 = vperm.xlu1 %897, %v709_v8   ;;  %720 = vperm.xlu0 %896, %v710_v9  }
  0x78   :  { %791 = vperm.xlu2 %898, %v788_v10  }
  0x79   :  { %v159_v16 = vpop.permute.xlu1 %158  ;;  %v164_v18 = vpop.permute.xlu0 %163 }
  0x7a   :  { %v204_v44 = vpop.permute.xlu2 %203 }
  0x81   :  { %v224_v23 = vpop.permute.xlu1 %223  ;;  %v229_v24 = vpop.permute.xlu0 %228 }
  0x82   :  { %v129_v50 = vpop.permute.xlu2 %128 }
  0x87   :  { %v1246_v11 = vpop.f32.mrf.mxu0  ;;  %v367_v30 = vpop.f32.mrf.mxu1 }
  0x88   :  { %v368_v35 = vadd.f32 %v367_v30, %v164_v18 }
  0x89   :  { %v214_v28 = vpop.permute.xlu1 %213  ;;  %v149_v29 = vpop.permute.xlu0 %148 }
  0x8a   :  { %v421_v41 = vmax.f32 %v368_v35, 0.0  ;;  %v189_v55 = vpop.permute.xlu2 %188 }
  0x8e   :  { %v1248_v12 = vpop.f32.mrf.mxu3 }
  0x8f   :  { %v1250_v13 = vpop.f32.mrf.mxu0  ;;  %v1262_v38 = vpop.f32.mrf.mxu1 }
  0x91   :  { %v139_v34 = vpop.permute.xlu1 %138  ;;  %v209_v36 = vpop.permute.xlu0 %208 }
  0x92   :  { %v114_v7 = vpop.permute.xlu2 %113  ;;  %v385_v9 = vpop.f32.mrf.mxu2 }
  0x96   :  { %v1252_v14 = vpop.f32.mrf.mxu3 }
  0x97   :  { %v1254_v15 = vpop.f32.mrf.mxu0  ;;  %v1264_v48 = vpop.f32.mrf.mxu1  ;;  %v392_v30 = vadd.f32 %v1252_v14, %v204_v44 }
  0x99   :  { %v199_v45 = vpop.permute.xlu1 %198  ;;  %v134_v46 = vpop.permute.xlu0 %133 }
  0x9e   :  { %v394_v17 = vpop.f32.mrf.mxu3 }
  0x9f   :  { %v1256_v19 = vpop.f32.mrf.mxu0  ;;  %v376_v53 = vpop.f32.mrf.mxu1  ;;  %v395_v6 = vadd.f32 %v394_v17, %v209_v36  ;;  %v429_v36 = vmax.f32 %v392_v30, 0.0 }
  0xa1   :  { %v194_v51 = vpop.permute.xlu0 %193  ;;  %v124_v52 = vpop.permute.xlu1 %123  ;;  %v430_v17 = vmax.f32 %v395_v6, 0.0 }
  0xa6   :  { %v397_v20 = vpop.f32.mrf.mxu3 }
  0xa7   :  { %v1258_v21 = vpop.f32.mrf.mxu0  ;;  %v379_v58 = vpop.f32.mrf.mxu1  ;;  %v398_v1 = vadd.f32 %v397_v20, %v214_v28  ;;  %v389_v20 = vadd.f32 %v1248_v12, %v199_v45 }
  0xa8   :  { %v174_v45 = vpop.permute.xlu2 %173 }
  0xa9   :  { %v184_v56 = vpop.permute.xlu1 %183  ;;  %v119_v57 = vpop.permute.xlu0 %118 }
  0xaa   :  { %v341_v12 = vadd.f32 %v1256_v19, %v119_v57 }
  0xae   :  { %v400_v25 = vpop.f32.mrf.mxu3 }
  0xaf   :  { %v1260_v26 = vpop.f32.mrf.mxu0  ;;  %v401_v62 = vadd.f32 %v400_v25, %v219_v27  ;;  %v382_v28 = vpop.f32.mrf.mxu1 }
  0xb1   :  { %v432_v8 = vmax.f32 %v401_v62, 0.0 }
  0xb6   :  { %v403_v31 = vpop.f32.mrf.mxu3 }
  0xb7   :  { %v349_v32 = vpop.f32.mrf.mxu0  ;;  %v404_v59 = vadd.f32 %v403_v31, %v224_v23  ;;  %v179_v23 = vpop.permute.xlu0 %178  ;;  %v431_v31 = vmax.f32 %v398_v1, 0.0 }
  0xb8   :  { %v350_v25 = vadd.f32 %v349_v32, %v134_v46  ;;  %v344_v32 = vadd.f32 %v1258_v21, %v124_v52  ;;  %v377_v46 = vadd.f32 %v376_v53, %v179_v23  ;;  %v412_v52 = vmax.f32 %v341_v12, 0.0  ;;  %v555_v12 = vld [vmem:[%s1348_s5 + $0x10] sm:$0xff] }
  0xb9   :  { %v433_v2 = vmax.f32 %v404_v59, 0.0 }
  0xba   :  { %v415_v14 = vmax.f32 %v350_v25, 0.0  ;;  %v424_v57 = vmax.f32 %v377_v46, 0.0 }
  0xbe   :  { %v406_v37 = vpop.f32.mrf.mxu3 }
  0xbf   :  { %v407_v39 = vadd.f32 %v406_v37, %v229_v24  ;;  %v352_v40 = vpop.f32.mrf.mxu0  ;;  %v383_v37 = vadd.f32 %v382_v28, %v189_v55  ;;  %v104_v55 = vpop.permute.xlu0 %103 }
  0xc0   :  { %v353_v10 = vadd.f32 %v352_v40, %v139_v34  ;;  %v428_v40 = vmax.f32 %v389_v20, 0.0  ;;  %v332_v53 = vadd.f32 %v1246_v11, %v104_v55  ;;  %v449_v11 = vld [vmem:[%s1346_s3 + $0x8] sm:$0xff] }
  0xc1   :  { %v434_v42 = vmax.f32 %v407_v39, 0.0 }
  0xc2   :  { %v416_v35 = vmax.f32 %v353_v10, 0.0  ;;  %v473_v10 = vpop.permute.xlu2 %472 }
  0xc3   :  { %v447_v43 = vmax.f32 %v421_v41, %v434_v42  ;;  %v380_v42 = vadd.f32 %v379_v58, %v184_v56 }
  0xc4   :  { %v442_v44 = vmax.f32 %v416_v35, %v429_v36 }
  0xc5   :  { %512 = vmatpush.msrb.mxu1 %v447_v43  ;;  %v425_v21 = vmax.f32 %v380_v42, 0.0  ;;  %v554_v42 = vld [vmem:[%s1348_s5 + $0x8] sm:$0xff] }
  0xc7   :  { %v355_v47 = vpop.f32.mrf.mxu0 }
  0xc8   :  { %v356_v3 = vadd.f32 %v355_v47, %v144_v33  ;;  %v347_v33 = vadd.f32 %v1260_v26, %v129_v50  ;;  %v426_v26 = vmax.f32 %v383_v37, 0.0  ;;  %v441_v47 = vmax.f32 %v415_v14, %v428_v40 }
  0xc9   :  { %v374_v50 = vadd.f32 %v1264_v48, %v174_v45  ;;  %v438_v48 = vmax.f32 %v412_v52, %v425_v21 }
  0xca   :  { %v417_v27 = vmax.f32 %v356_v3, 0.0  ;;  %v414_v43 = vmax.f32 %v347_v33, 0.0  ;;  %v451_v3 = vld [vmem:[%s1346_s3 + $0x18] sm:$0xff]  ;;  %v483_v23 = vpop.permute.xlu2 %482 }
  0xcc   :  { %v443_v39 = vmax.f32 %v417_v27, %v430_v17 }
  0xcf   :  { %v358_v49 = vpop.f32.mrf.mxu0 }
  0xd0   :  { %v359_v63 = vadd.f32 %v358_v49, %v149_v29  ;;  %v386_v29 = vadd.f32 %v385_v9, %v194_v51  ;;  %v338_v49 = vadd.f32 %v1254_v15, %v114_v7  ;;  %v413_v51 = vmax.f32 %v344_v32, 0.0 }
  0xd1   :  { %v423_v15 = vmax.f32 %v374_v50, 0.0 }
  0xd2   :  { %v418_v18 = vmax.f32 %v359_v63, 0.0  ;;  %v427_v41 = vmax.f32 %v386_v29, 0.0  ;;  %v439_v59 = vmax.f32 %v413_v51, %v426_v26  ;;  %v409_v63 = vmax.f32 %v332_v53, 0.0  ;;  %v579_v46 = vpop.permute.xlu2 %578  ;;  %v627_v53 = vld [vmem:[%s1350_s7] sm:$0xff] }
  0xd4   :  { %v444_v34 = vmax.f32 %v418_v18, %v431_v31  ;;  %v440_v19 = vmax.f32 %v414_v43, %v427_v41  ;;  %v553_v41 = vld [vmem:[%s1348_s5] sm:$0xff]  ;;  %v556_v43 = vld [vmem:[%s1348_s5 + $0x18] sm:$0x1] }
  0xd7   :  { %v361_v54 = vpop.f32.mrf.mxu0 }
  0xd8   :  { %v362_v60 = vadd.f32 %v361_v54, %v154_v22  ;;  %v109_v22 = vpop.permute.xlu1 %108 }
  0xd9   :  { %v335_v56 = vadd.f32 %v1250_v13, %v109_v22 }
  0xda   :  { %v419_v4 = vmax.f32 %v362_v60, 0.0  ;;  %v411_v60 = vmax.f32 %v338_v49, 0.0  ;;  %v564_v52 = vpop.permute.xlu2 %563 }
  0xdf   :  { %v364_v61 = vpop.f32.mrf.mxu0 }
  0xe0   :  { %v365_v0 = vadd.f32 %v364_v61, %v159_v16  ;;  %v445_v16 = vmax.f32 %v419_v4, %v432_v8  ;;  %v169_v54 = vpop.permute.xlu1 %168  ;;  %v410_v61 = vmax.f32 %v335_v56, 0.0  ;;  %v452_v4 = vld [vmem:[%s1346_s3 + $0x20] sm:$0xff] }
  0xe1   :  { %v371_v58 = vadd.f32 %v1262_v38, %v169_v54  ;;  %v448_v38 = vld [vmem:[%s1346_s3] sm:$0xff] }
  0xe2   :  { %v420_v5 = vmax.f32 %v365_v0, 0.0  ;;  %v437_v0 = vmax.f32 %v411_v60, %v424_v57  ;;  %v436_v13 = vmax.f32 %v410_v61, %v423_v15  ;;  %v629_v60 = vld [vmem:[%s1350_s7 + $0x10] sm:$0xff]  ;;  %v630_v15 = vld [vmem:[%s1350_s7 + $0x18] sm:$0x7] }
  0xe3   :  { %v422_v62 = vmax.f32 %v371_v58, 0.0 }
  0xe4   :  { %v446_v24 = vmax.f32 %v420_v5, %v433_v2  ;;  %v450_v2 = vld [vmem:[%s1346_s3 + $0x10] sm:$0xff]  ;;  %v453_v5 = vld [vmem:[%s1346_s3 + $0x28] sm:$0xff] }
  0xe5   :  { %v435_v1 = vmax.f32 %v409_v63, %v422_v62 }
  0xe6   :  { %513 = vmatpush.msrb.mxu1 %v446_v24  ;;  %v488_v24 = vpop.permute.xlu0 %487 }
  0xe8   :  { %514 = vmatpush.msrb.mxu1 %v445_v16  ;;  %v468_v18 = vpop.permute.xlu1 %467 }
  0xea   :  { %515 = vmatpush.msrb.mxu1 %v444_v34 }
  0xec   :  { %516 = vmatpush.msrb.mxu1 %v443_v39 }
  0xee   :  { %517 = vmatpush.msrb.mxu1 %v442_v44  ;;  %v463_v29 = vpop.permute.xlu0 %462 }
  0xf0   :  { %518 = vmatpush.msrb.mxu1 %v441_v47  ;;  %v478_v25 = vpop.permute.xlu1 %477 }
  0xf2   :  { %519 = vmatpush.msrb.mxu1 %v440_v19 }
  0xf4   :  { %520 = vmatpush.msrb.mxu1 %v439_v59  ;;  %v628_v59 = vld [vmem:[%s1350_s7 + $0x8] sm:$0xff] }
  0xf6   :  { %521 = vmatpush.msrb.mxu1 %v438_v48  ;;  %v574_v47 = vpop.permute.xlu0 %573 }
  0xf8   :  { %522 = vmatpush.msrb.mxu1 %v437_v0  ;;  %v569_v54 = vpop.permute.xlu1 %568 }
  0xfa   :  { %523 = vmatpush.msrb.mxu1 %v436_v13 }
  0xfc   :  { %524 = vmatpush.msrb.mxu1 %v435_v1 }
  0xfd   :  { %866 = vmatmul.msk.f32.vlgmr.msrb.gmra.mxu1 %vm490_vm2, %v448_v38 }
  0xfe   :  { %v653_v63 = vpop.permute.xlu0 %652 }
 0x100   :  { %v648_v0 = vpop.permute.xlu1 %647 }
 0x105   :  { %867 = vmatmul.msk.f32.gmra.mxu1 %vm490_vm2, %v449_v11  ;;  %v643_v11 = vpop.permute.xlu2 %642 }
 0x10d   :  { %868 = vmatmul.msk.f32.gmra.mxu1 %vm490_vm2, %v450_v2 }
 0x115   :  { %869 = vmatmul.msk.f32.gmra.mxu1 %vm490_vm2, %v451_v3 }
 0x11d   :  { %870 = vmatmul.msk.f32.gmra.mxu1 %vm490_vm2, %v452_v4  ;;  %v638_v4 = vpop.permute.xlu0 %637 }
 0x125   :  { %871 = vmatmul.msk.f32.gmra.mxu1 %vm490_vm2, %v453_v5 }
 0x17a   :  { %v526_v6 = vpop.f32.mrf.mxu1 }
 0x17b   :  { %v527_v17 = vadd.f32 %v526_v6, %v463_v29 }
 0x17d   :  { %v544_v39 = vmax.f32 %v527_v17, 0.0 }
 0x182   :  { %v529_v7 = vpop.f32.mrf.mxu1 }
 0x183   :  { %v530_v16 = vadd.f32 %v529_v7, %v468_v18  ;;  %v707_v18 = vld [vmem:[%s1352_s9 + $0x10] sm:$0xff] }
 0x185   :  { %v545_v36 = vmax.f32 %v530_v16, 0.0  ;;  %v721_v16 = vpop.permute.xlu0 %720 }
 0x18a   :  { %v532_v8 = vpop.f32.mrf.mxu1 }
 0x18b   :  { %v533_v22 = vadd.f32 %v532_v8, %v473_v10  ;;  %v706_v10 = vld [vmem:[%s1352_s9 + $0x8] sm:$0xff] }
 0x18d   :  { %v546_v33 = vmax.f32 %v533_v22, 0.0  ;;  %v731_v22 = vpop.permute.xlu1 %730 }
 0x192   :  { %v535_v9 = vpop.f32.mrf.mxu1 }
 0x193   :  { %v536_v20 = vadd.f32 %v535_v9, %v478_v25  ;;  %v705_v9 = vld [vmem:[%s1352_s9] sm:$0xff]  ;;  %v726_v25 = vpop.permute.xlu2 %725 }
 0x195   :  { %v547_v37 = vmax.f32 %v536_v20, 0.0  ;;  %v716_v17 = vpop.permute.xlu1 %715 }
 0x197   :  { %v550_v32 = vmax.f32 %v544_v39, %v547_v37 }
 0x19a   :  { %v538_v30 = vpop.f32.mrf.mxu1 }
 0x19b   :  { %v539_v31 = vadd.f32 %v538_v30, %v483_v23 }
 0x19d   :  { %v548_v35 = vmax.f32 %v539_v31, 0.0 }
 0x19f   :  { %v551_v40 = vmax.f32 %v545_v36, %v548_v35 }
 0x1a2   :  { %v541_v27 = vpop.f32.mrf.mxu1 }
 0x1a3   :  { %v542_v28 = vadd.f32 %v541_v27, %v488_v24  ;;  %v708_v24 = vld [vmem:[%s1352_s9 + $0x18] sm:$0x7] }
 0x1a5   :  { %v549_v34 = vmax.f32 %v542_v28, 0.0 }
 0x1a7   :  { %v552_v14 = vmax.f32 %v546_v33, %v549_v34 }
 0x1a9   :  { %607 = vmatpush.msrb.mxu2 %v552_v14 }
 0x1ab   :  { %608 = vmatpush.msrb.mxu2 %v551_v40 }
 0x1ad   :  { %609 = vmatpush.msrb.mxu2 %v550_v32 }
 0x1ae   :  { %872 = vmatmul.msk.f32.vlgmr.msrb.gmra.mxu2 %vm581_vm3, %v553_v41  ;;  %v783_v41 = vld [vmem:[%s1354_s11] sm:$0x1] }
 0x1b6   :  { %873 = vmatmul.msk.f32.gmra.mxu2 %vm581_vm3, %v554_v42  ;;  %v792_v42 = vpop.permute.xlu2 %791 }
 0x1be   :  { %874 = vmatmul.msk.f32.gmra.mxu2 %vm581_vm3, %v555_v12  ;;  %v794_v12 = vperm.slane %v792_v42, 0 }
 0x1c6   :  { %875 = vmatmul.msk.f32.gmra.mxu2 %vm581_vm3, %v556_v43 }
 0x231   :  { %v611_v44 = vpop.f32.mrf.mxu2 }
 0x232   :  { %v612_v56 = vadd.f32 %v611_v44, %v564_v52 }
 0x234   :  { %v623_v58 = vmax.f32 %v612_v56, 0.0 }
 0x239   :  { %v614_v45 = vpop.f32.mrf.mxu2 }
 0x23a   :  { %v615_v55 = vadd.f32 %v614_v45, %v569_v54 }
 0x23c   :  { %v624_v57 = vmax.f32 %v615_v55, 0.0 }
 0x241   :  { %v617_v26 = vpop.f32.mrf.mxu2 }
 0x242   :  { %v618_v50 = vadd.f32 %v617_v26, %v574_v47 }
 0x244   :  { %v625_v19 = vmax.f32 %v618_v50, 0.0 }
 0x249   :  { %v620_v49 = vpop.f32.mrf.mxu2 }
 0x24a   :  { %v621_v51 = vadd.f32 %v620_v49, %v579_v46 }
 0x24c   :  { %v626_v21 = vmax.f32 %v621_v51, 0.0 }
 0x24e   :  { %876 = vmatpush.msk.msrb.mxu3 %vm668_vm4, %v626_v21 }
 0x250   :  { %685 = vmatpush.msrb.mxu3 %v625_v19 }
 0x252   :  { %686 = vmatpush.msrb.mxu3 %v624_v57 }
 0x254   :  { %687 = vmatpush.msrb.mxu3 %v623_v58 }
 0x255   :  { %877 = vmatmul.msk.f32.vlgmr.msrb.gmra.mxu3 %vm655_vm5, %v627_v53 }
 0x25d   :  { %878 = vmatmul.msk.f32.gmra.mxu3 %vm655_vm5, %v628_v59 }
 0x265   :  { %879 = vmatmul.msk.f32.gmra.mxu3 %vm655_vm5, %v629_v60 }
 0x26d   :  { %880 = vmatmul.msk.f32.gmra.mxu3 %vm655_vm5, %v630_v15 }
 0x2d8   :  { %v689_v61 = vpop.f32.mrf.mxu3 }
 0x2d9   :  { %v690_v5 = vadd.f32 %v689_v61, %v638_v4 }
 0x2db   :  { %v701_v8 = vmax.f32 %v690_v5, 0.0 }
 0x2e0   :  { %v692_v48 = vpop.f32.mrf.mxu3 }
 0x2e1   :  { %v693_v2 = vadd.f32 %v692_v48, %v643_v11 }
 0x2e3   :  { %v702_v7 = vmax.f32 %v693_v2, 0.0 }
 0x2e8   :  { %v695_v62 = vpop.f32.mrf.mxu3 }
 0x2e9   :  { %v696_v1 = vadd.f32 %v695_v62, %v648_v0 }
 0x2eb   :  { %v703_v6 = vmax.f32 %v696_v1, 0.0 }
 0x2f0   :  { %v698_v13 = vpop.f32.mrf.mxu3 }
 0x2f1   :  { %v699_v38 = vadd.f32 %v698_v13, %v653_v63 }
 0x2f3   :  { %v704_v3 = vmax.f32 %v699_v38, 0.0 }
 0x2f5   :  { %881 = vmatpush.msk.msra.mxu2 %vm746_vm6, %v704_v3 }
 0x2f7   :  { %763 = vmatpush.msra.mxu2 %v703_v6 }
 0x2f9   :  { %764 = vmatpush.msra.mxu2 %v702_v7 }
 0x2fb   :  { %765 = vmatpush.msra.mxu2 %v701_v8 }
 0x2fc   :  { %882 = vmatmul.msk.f32.vlgmr.msra.gmra.mxu2 %vm733_vm7, %v705_v9 }
 0x304   :  { %883 = vmatmul.msk.f32.gmra.mxu2 %vm733_vm7, %v706_v10 }
 0x30c   :  { %884 = vmatmul.msk.f32.gmra.mxu2 %vm733_vm7, %v707_v18 }
 0x314   :  { %885 = vmatmul.msk.f32.gmra.mxu2 %vm733_vm7, %v708_v24 }
 0x37f   :  { %v767_v30 = vpop.f32.mrf.mxu2 }
 0x380   :  { %v768_v33 = vadd.f32 %v767_v30, %v716_v17 }
 0x382   :  { %v779_v14 = vmax.f32 %v768_v33, 0.0 }
 0x384   :  { %v784_v32 = vadd.f32 %v779_v14, %v701_v8 }
 0x387   :  { %v770_v23 = vpop.f32.mrf.mxu2 }
 0x388   :  { %v771_v28 = vadd.f32 %v770_v23, %v721_v16 }
 0x38a   :  { %v780_v36 = vmax.f32 %v771_v28, 0.0 }
 0x38c   :  { %v785_v40 = vadd.f32 %v780_v36, %v702_v7 }
 0x38f   :  { %v773_v31 = vpop.f32.mrf.mxu2 }
 0x390   :  { %v774_v27 = vadd.f32 %v773_v31, %v726_v25 }
 0x392   :  { %v781_v35 = vmax.f32 %v774_v27, 0.0 }
 0x394   :  { %v786_v39 = vadd.f32 %v781_v35, %v703_v6 }
 0x397   :  { %v776_v20 = vpop.f32.mrf.mxu2 }
 0x398   :  { %v777_v29 = vadd.f32 %v776_v20, %v731_v22 }
 0x39a   :  { %v782_v34 = vmax.f32 %v777_v29, 0.0 }
 0x39c   :  { %v787_v37 = vadd.f32 %v782_v34, %v704_v3 }
 0x39e   :  { %886 = vmatpush.msk.msra.mxu3 %vm746_vm6, %v787_v37 }
 0x3a0   :  { %814 = vmatpush.msra.mxu3 %v786_v39 }
 0x3a2   :  { %815 = vmatpush.msra.mxu3 %v785_v40 }
 0x3a4   :  { %816 = vmatpush.msra.mxu3 %v784_v32 }
 0x3a5   :  { %887 = vmatmul.msk.f32.vlgmr.msra.gmra.mxu3 %vm733_vm7, %v783_v41 }
 0x428   :  { %v818_v43 = vpop.f32.mrf.mxu3 }
 0x429   :  { %v819_v44 = vadd.f32 %v818_v43, %v794_v12 }
 0x42b   :  { %v821_v45 = vmax.f32 %v819_v44, 0.0 }
 0x42d   :  { %822 = vst [vmem:[#allocation3] sm:$0x1] %v821_v45 }
 0x42e   :  { %833 = dma.vmem_to_hbm [thread:$0]  %s829_s2, 16, %s831_s23, [#allocation4]  }
 0x42f   :  { %923 = dma.done.wait [#allocation4], 16  }
 0x430   :  { %924 = vsyncadd [#allocation4], 4294967280 }
 0x431   :  { %838 = vsyncpa [#allocation4], 1 }

</bundles_post_ra>
